<compile_context>
chip_gen: v7x
topology: tpu7x:2x2x1
jax: 0.10.0
libtpu: 0.0.40
codegen_flags: <defaults>
</compile_context>

<pallas_src>
import math
from functools import partial

import jax
import jax.numpy as jnp
import numpy as np
from jax.experimental import pallas as pl
from jax.experimental.pallas import tpu as pltpu


def _round_up(x, m):
    return ((x + m - 1) // m) * m


def _vmem_capacity_bytes():
    try:
        info = pltpu.get_tpu_info()
        cap = getattr(info, "vmem_capacity_bytes", None)
        if cap:
            return int(cap)
    except Exception:
        pass
    return 64 * 1024 * 1024  # conservative default (v7x per-TC VMEM)


_VMEM_CAP = _vmem_capacity_bytes()


# ----------------------------- Pallas kernels -------------------------------

def _mask_tile(u_ref, k_offset, tk, bsx, pieces, dtype):
    """(tk, tn) {0,1} mask tile:  mask[r, c] = u[(k_offset + r) // bsx, c].

    Piece membership is computed with static compares on a sublane iota (no
    vector integer division), so K tiles may straddle piece boundaries.
    Rows past in_features (zero-padded K) match no piece -> mask row is 0.
    """
    tn = u_ref.shape[1]
    row = k_offset + jax.lax.broadcasted_iota(jnp.int32, (tk, 1), 0)
    mask = jnp.zeros((tk, tn), jnp.float32)
    for p in range(pieces):  # `pieces` is a small static int -> unrolled
        in_piece = jnp.logical_and(row >= p * bsx, row < (p + 1) * bsx)
        mask = mask + jnp.where(in_piece, u_ref[p:p + 1, :], 0.0)
    return mask.astype(dtype)


def _lossy_kernel_acc(u_ref, x_ref, w_ref, b_ref, o_ref, acc_ref, *,
                      bsx, pieces, tk):
    """Multi-K-step tile: f32 accumulator seeded with the bias at k == 0."""
    kk = pl.program_id(2)

    @pl.when(kk == 0)
    def _init():
        acc_ref[...] = jnp.broadcast_to(b_ref[...], acc_ref.shape)

    mask = _mask_tile(u_ref, kk * tk, tk, bsx, pieces, w_ref.dtype)
    acc_ref[...] += jnp.dot(x_ref[...], w_ref[...] * mask,
                            preferred_element_type=jnp.float32)

    @pl.when(kk == pl.num_programs(2) - 1)
    def _store():
        o_ref[...] = acc_ref[...].astype(o_ref.dtype)


def _lossy_kernel_single(u_ref, x_ref, w_ref, b_ref, o_ref, *, bsx, pieces):
    """Single-K-step tile: no scratch accumulator / K grid axis needed."""
    tk = w_ref.shape[0]
    mask = _mask_tile(u_ref, 0, tk, bsx, pieces, w_ref.dtype)
    acc = jnp.dot(x_ref[...], w_ref[...] * mask,
                  preferred_element_type=jnp.float32)
    o_ref[...] = (acc + b_ref[...]).astype(o_ref.dtype)


# ------------------------------ Host wrapper ---------------------------------

def _choose_tm(m, n_blocks, tm_req):
    tm = min(_round_up(tm_req, 8), _round_up(m, 8))
    # Keep >= 2 parallel (i, j) output blocks when possible so v7x's two
    # TensorCores (sharded over the "parallel" grid axes) both get work.
    while tm > 8 and pl.cdiv(m, tm) * n_blocks < 2:
        tm = _round_up(max(tm // 2, 8), 8)
    return tm


@partial(jax.jit, static_argnames=("n_out", "pieces", "tm", "tn", "tk"))
def lossy_linear_forward(x, w_padded_t, b_padded, u, *,
                         n_out, pieces, tm, tn, tk):
    """y = x @ (W^T * mask) + b, mask applied in-kernel from the tiny keep
    matrix `u` of shape (round_up(pieces, 8), N_padded)."""
    m, k = x.shape
    kp, np_ = w_padded_t.shape
    cdtype = w_padded_t.dtype
    out_dtype = x.dtype
    u_rows = u.shape[0]

    assert k % pieces == 0, "in_features must be divisible by pieces"
    assert kp % tk == 0 and np_ % tn == 0
    bsx = k // pieces

    n_blocks = np_ // tn
    tm_f = _choose_tm(m, n_blocks, tm)
    mp = _round_up(m, tm_f)

    x_p = x
    if mp != m or kp != k:
        x_p = jnp.pad(x, ((0, mp - m), (0, kp - k)))
    x_p = x_p.astype(cdtype)

    k_steps = kp // tk

    # VMEM budget from the actual tile dtypes (+ double buffering, acc and
    # in-kernel mask temporaries), capped at 75% of this chip's VMEM capacity.
    isz = jnp.dtype(cdtype).itemsize
    osz = jnp.dtype(out_dtype).itemsize
    need = (2 * (tm_f * tk + tk * tn) * isz          # dbl-buffered x & W tiles
            + 2 * (u_rows * tn + tn) * 4             # keep matrix + bias (f32)
            + 2 * tm_f * tn * osz                    # dbl-buffered output tile
            + tm_f * tn * 4                          # f32 accumulator scratch
            + 3 * tk * tn * 4)                       # mask temporaries
    vmem_limit = int(min(max(int(need * 1.25), 16 * 1024 * 1024),
                         int(_VMEM_CAP * 0.75)))

    if k_steps == 1:
        grid = (mp // tm_f, np_ // tn)
        out = pl.pallas_call(
            partial(_lossy_kernel_single, bsx=bsx, pieces=pieces),
            out_shape=jax.ShapeDtypeStruct((mp, np_), out_dtype),
            grid_spec=pltpu.PrefetchScalarGridSpec(
                num_scalar_prefetch=0,
                grid=grid,
                in_specs=[
                    pl.BlockSpec((u_rows, tn), lambda i, j: (0, j)),
                    pl.BlockSpec((tm_f, tk), lambda i, j: (i, 0)),
                    pl.BlockSpec((tk, tn), lambda i, j: (0, j)),
                    pl.BlockSpec((1, tn), lambda i, j: (0, j)),
                ],
                out_specs=pl.BlockSpec((tm_f, tn), lambda i, j: (i, j)),
            ),
            compiler_params=pltpu.CompilerParams(
                dimension_semantics=("parallel", "parallel"),
                vmem_limit_bytes=vmem_limit),
        )(u, x_p, w_padded_t, b_padded)
    else:
        grid = (mp // tm_f, np_ // tn, k_steps)
        out = pl.pallas_call(
            partial(_lossy_kernel_acc, bsx=bsx, pieces=pieces, tk=tk),
            out_shape=jax.ShapeDtypeStruct((mp, np_), out_dtype),
            grid_spec=pltpu.PrefetchScalarGridSpec(
                num_scalar_prefetch=0,
                grid=grid,
                in_specs=[
                    pl.BlockSpec((u_rows, tn), lambda i, j, kk: (0, j)),
                    pl.BlockSpec((tm_f, tk), lambda i, j, kk: (i, kk)),
                    pl.BlockSpec((tk, tn), lambda i, j, kk: (kk, j)),
                    pl.BlockSpec((1, tn), lambda i, j, kk: (0, j)),
                ],
                out_specs=pl.BlockSpec((tm_f, tn), lambda i, j, kk: (i, j)),
                scratch_shapes=[pltpu.VMEM((tm_f, tn), jnp.float32)],
            ),
            compiler_params=pltpu.CompilerParams(
                dimension_semantics=("parallel", "parallel", "arbitrary"),
                vmem_limit_bytes=vmem_limit),
        )(u, x_p, w_padded_t, b_padded)

    return out[:m, :n_out]


# -------------------------------- Module -------------------------------------

class LossyLinearPallas:
    """JAX/Pallas equivalent of the torch Lossy_Linear forward pass."""

    def __init__(self, in_features, out_features, pieces=4, loss_prob=0.1,
                 bias=True, *, key, compute_dtype=jnp.bfloat16,
                 tm=512, tn=512, tk=None):
        assert in_features % pieces == 0, (
            "Lossy_Linear's mask only has a valid shape when "
            "in_features % pieces == 0")
        self.in_features = in_features
        self.out_features = out_features
        self.pieces = pieces
        self.loss_prob = loss_prob
        self.compute_dtype = compute_dtype
        self.tm_req = tm

        # Tile sizes along N and K are fixed at init so the padded / cast
        # weight and bias can be cached (no per-call HBM pass over W).
        self.tn = min(_round_up(tn, 128), _round_up(out_features, 128))
        k_pad = _round_up(in_features, 128)
        if tk is None:
            # Moderate K: single K step (no acc scratch / per-step acc adds);
            # the 2048 cap keeps (tm,K)+(K,tn) comfortably inside v7x VMEM.
            self.tk = k_pad if k_pad <= 2048 else 1024
        else:
            self.tk = min(_round_up(tk, 128), k_pad)
        self.n_padded = _round_up(out_features, self.tn)
        self.k_padded = _round_up(in_features, self.tk)
        self.u_rows = _round_up(pieces, 8)

        stdv = 1.0 / math.sqrt(in_features)
        k_w, k_b = jax.random.split(key)
        # weight: (out_features, in_features), uniform(-stdv, stdv) — matches
        # reset_parameters (deterministic via PRNGKey, not a checkpoint).
        self.weight = jax.random.uniform(
            k_w, (out_features, in_features), jnp.float32, -stdv, stdv)
        if bias:
            self.bias = jax.random.uniform(
                k_b, (out_features,), jnp.float32, -stdv, stdv)
        else:
            self.bias = jnp.zeros((out_features,), jnp.float32)

        # Cache the padded / transposed / cast weight and padded f32 bias ONCE.
        w_t = self.weight.T  # (in_features, out_features)
        self.w_padded = jnp.pad(
            w_t, ((0, self.k_padded - in_features),
                  (0, self.n_padded - out_features))).astype(compute_dtype)
        self.b_padded = jnp.pad(
            self.bias.astype(jnp.float32),
            (0, self.n_padded - out_features)).reshape(1, self.n_padded)

    def _build_keep_matrix(self, r_keep):
        """Tiny (round_up(pieces, 8), N_padded) f32 keep matrix u with
        u[p, c] = r[p, c // block_size_y]; remainder / padded columns kept."""
        bsy = self.out_features // self.pieces
        parts = []
        if bsy > 0:
            parts.append(jnp.repeat(r_keep.astype(jnp.float32), bsy, axis=1))
        tail = self.n_padded - self.pieces * bsy
        if tail > 0:
            parts.append(jnp.ones((self.pieces, tail), jnp.float32))
        u = parts[0] if len(parts) == 1 else jnp.concatenate(parts, axis=1)
        pad_rows = self.u_rows - self.pieces
        if pad_rows > 0:
            u = jnp.pad(u, ((0, pad_rows), (0, 0)), constant_values=1.0)
        return u

    def __call__(self, x, *, mask_key, tm=None):
        # r = torch.rand((pieces, pieces)) > loss_prob  (fresh draw per call)
        r = (jax.random.uniform(mask_key, (self.pieces, self.pieces))
             > self.loss_prob)
        u = self._build_keep_matrix(r)
        y = lossy_linear_forward(
            x, self.w_padded, self.b_padded, u,
            n_out=self.out_features, pieces=self.pieces,
            tm=tm if tm is not None else self.tm_req,
            tn=self.tn, tk=self.tk)
        return y, r


# --------------------------- Reference (verification) ------------------------

def _reference(x, weight, bias, r_keep, pieces, compute_dtype):
    """Pure-JAX replica of F.linear(x, W * mask^T, b) with the same operand
    precision (bf16 operands, f32 accumulation) as the kernel."""
    out_f, in_f = weight.shape
    bsx = in_f // pieces
    bsy = out_f // pieces
    r_np = np.asarray(r_keep, np.float32)
    u = np.concatenate(
        [np.repeat(r_np, bsy, axis=1),
         np.ones((pieces, out_f % pieces), np.float32)], axis=1)
    mask = np.repeat(u, bsx, axis=0)                       # (in, out)
    w_masked_t = np.asarray(weight).T * mask               # (in, out), f32
    xd = x.astype(compute_dtype)
    wd = jnp.asarray(w_masked_t).astype(compute_dtype)
    y = jnp.dot(xd, wd, preferred_element_type=jnp.float32)
    return (y + bias).astype(x.dtype)


# ----------------------------------- Main ------------------------------------

if __name__ == "__main__":
    key = jax.random.PRNGKey(0)
    k1, k2, kx1, kx2, km1, km2 = jax.random.split(key, 6)

    # Case 1: single-K-step kernel (K fits one tile), out_features % pieces
    # remainder columns, and a row count that exercises the >=2-parallel-
    # blocks tm clamp (keeps both TCs busy on v7x).
    mod1 = LossyLinearPallas(256, 198, pieces=4, loss_prob=0.2, bias=True,
                             key=k1)
    x1 = jax.random.normal(kx1, (96, 256), jnp.float32)
    y1, r1 = mod1(x1, mask_key=km1)
    y1 = jax.block_until_ready(y1)
    y1_ref = _reference(x1, mod1.weight, mod1.bias, r1, mod1.pieces,
                        mod1.compute_dtype)
    np.testing.assert_allclose(np.asarray(y1), np.asarray(y1_ref),
                               rtol=1e-2, atol=1e-2)

    # Case 2: multi-K-step accumulator kernel with K tiles straddling piece
    # boundaries (bsx=96 vs tk=128) and padded out_features.
    mod2 = LossyLinearPallas(384, 300, pieces=4, loss_prob=0.3, bias=True,
                             key=k2, tm=64, tn=128, tk=128)
    x2 = jax.random.normal(kx2, (40, 384), jnp.float32)
    y2, r2 = mod2(x2, mask_key=km2)
    y2 = jax.block_until_ready(y2)
    y2_ref = _reference(x2, mod2.weight, mod2.bias, r2, mod2.pieces,
                        mod2.compute_dtype)
    np.testing.assert_allclose(np.asarray(y2), np.asarray(y2_ref),
                               rtol=1e-2, atol=1e-2)

    print("KERNEL_OK")
</pallas_src>

<mosaic_0001>
module attributes {stable_mosaic.version = 11 : i64} {
  func.func @_lossy_kernel_single(%arg0: i32, %arg1: i32, %arg2: memref<8x256xf32, #tpu.memory_space<vmem>>, %arg3: memref<48x256xbf16, #tpu.memory_space<vmem>>, %arg4: memref<256x256xbf16, #tpu.memory_space<vmem>>, %arg5: memref<1x256xf32, #tpu.memory_space<vmem>>, %arg6: memref<48x256xf32, #tpu.memory_space<vmem>>) attributes {dimension_semantics = [#tpu.dimension_semantics<parallel>, #tpu.dimension_semantics<parallel>], iteration_bounds = array<i64: 2, 1>, scalar_prefetch = 0 : i64, scratch_operands = 0 : i64, tpu.core_type = #tpu.core_type<tc>, window_params = [{transform_indices = @transform_0, window_bounds = array<i64: 8, 256>}, {transform_indices = @transform_1, window_bounds = array<i64: 48, 256>}, {transform_indices = @transform_2, window_bounds = array<i64: 256, 256>}, {transform_indices = @transform_3, window_bounds = array<i64: 1, 256>}, {transform_indices = @transform_4, window_bounds = array<i64: 48, 256>}]} {
    %0 = tpu.iota {dimensions = array<i32: 0>} : vector<256x1xi32>
    %c0_i32 = arith.constant 0 : i32
    %1 = vector.broadcast %c0_i32 : i32 to vector<256x1xi32>
    %2 = arith.addi %1, %0 : vector<256x1xi32>
    %cst = arith.constant 0.000000e+00 : f32
    %3 = vector.broadcast %cst : f32 to vector<256x256xf32>
    %c0_i32_0 = arith.constant 0 : i32
    %4 = vector.broadcast %c0_i32_0 : i32 to vector<256x1xi32>
    %5 = arith.cmpi sge, %2, %4 : vector<256x1xi32>
    %c64_i32 = arith.constant 64 : i32
    %6 = vector.broadcast %c64_i32 : i32 to vector<256x1xi32>
    %7 = arith.cmpi slt, %2, %6 : vector<256x1xi32>
    %8 = arith.andi %5, %7 : vector<256x1xi1>
    %c0 = arith.constant 0 : index
    %c0_1 = arith.constant 0 : index
    %9 = vector.load %arg2[%c0, %c0_1] : memref<8x256xf32, #tpu.memory_space<vmem>>, vector<1x256xf32>
    %cst_2 = arith.constant 0.000000e+00 : f32
    %10 = vector.shape_cast %8 : vector<256x1xi1> to vector<256x1xi1>
    %11 = vector.broadcast %10 : vector<256x1xi1> to vector<256x256xi1>
    %12 = vector.shape_cast %9 : vector<1x256xf32> to vector<1x256xf32>
    %13 = vector.broadcast %12 : vector<1x256xf32> to vector<256x256xf32>
    %14 = vector.broadcast %cst_2 : f32 to vector<256x256xf32>
    %15 = arith.select %11, %13, %14 : vector<256x256xi1>, vector<256x256xf32>
    %16 = arith.addf %3, %15 : vector<256x256xf32>
    %c64_i32_3 = arith.constant 64 : i32
    %17 = vector.broadcast %c64_i32_3 : i32 to vector<256x1xi32>
    %18 = arith.cmpi sge, %2, %17 : vector<256x1xi32>
    %c128_i32 = arith.constant 128 : i32
    %19 = vector.broadcast %c128_i32 : i32 to vector<256x1xi32>
    %20 = arith.cmpi slt, %2, %19 : vector<256x1xi32>
    %21 = arith.andi %18, %20 : vector<256x1xi1>
    %c1 = arith.constant 1 : index
    %c0_4 = arith.constant 0 : index
    %22 = vector.load %arg2[%c1, %c0_4] : memref<8x256xf32, #tpu.memory_space<vmem>>, vector<1x256xf32>
    %cst_5 = arith.constant 0.000000e+00 : f32
    %23 = vector.shape_cast %21 : vector<256x1xi1> to vector<256x1xi1>
    %24 = vector.broadcast %23 : vector<256x1xi1> to vector<256x256xi1>
    %25 = vector.shape_cast %22 : vector<1x256xf32> to vector<1x256xf32>
    %26 = vector.broadcast %25 : vector<1x256xf32> to vector<256x256xf32>
    %27 = vector.broadcast %cst_5 : f32 to vector<256x256xf32>
    %28 = arith.select %24, %26, %27 : vector<256x256xi1>, vector<256x256xf32>
    %29 = arith.addf %16, %28 : vector<256x256xf32>
    %c128_i32_6 = arith.constant 128 : i32
    %30 = vector.broadcast %c128_i32_6 : i32 to vector<256x1xi32>
    %31 = arith.cmpi sge, %2, %30 : vector<256x1xi32>
    %c192_i32 = arith.constant 192 : i32
    %32 = vector.broadcast %c192_i32 : i32 to vector<256x1xi32>
    %33 = arith.cmpi slt, %2, %32 : vector<256x1xi32>
    %34 = arith.andi %31, %33 : vector<256x1xi1>
    %c2 = arith.constant 2 : index
    %c0_7 = arith.constant 0 : index
    %35 = vector.load %arg2[%c2, %c0_7] : memref<8x256xf32, #tpu.memory_space<vmem>>, vector<1x256xf32>
    %cst_8 = arith.constant 0.000000e+00 : f32
    %36 = vector.shape_cast %34 : vector<256x1xi1> to vector<256x1xi1>
    %37 = vector.broadcast %36 : vector<256x1xi1> to vector<256x256xi1>
    %38 = vector.shape_cast %35 : vector<1x256xf32> to vector<1x256xf32>
    %39 = vector.broadcast %38 : vector<1x256xf32> to vector<256x256xf32>
    %40 = vector.broadcast %cst_8 : f32 to vector<256x256xf32>
    %41 = arith.select %37, %39, %40 : vector<256x256xi1>, vector<256x256xf32>
    %42 = arith.addf %29, %41 : vector<256x256xf32>
    %c192_i32_9 = arith.constant 192 : i32
    %43 = vector.broadcast %c192_i32_9 : i32 to vector<256x1xi32>
    %44 = arith.cmpi sge, %2, %43 : vector<256x1xi32>
    %c256_i32 = arith.constant 256 : i32
    %45 = vector.broadcast %c256_i32 : i32 to vector<256x1xi32>
    %46 = arith.cmpi slt, %2, %45 : vector<256x1xi32>
    %47 = arith.andi %44, %46 : vector<256x1xi1>
    %c3 = arith.constant 3 : index
    %c0_10 = arith.constant 0 : index
    %48 = vector.load %arg2[%c3, %c0_10] : memref<8x256xf32, #tpu.memory_space<vmem>>, vector<1x256xf32>
    %cst_11 = arith.constant 0.000000e+00 : f32
    %49 = vector.shape_cast %47 : vector<256x1xi1> to vector<256x1xi1>
    %50 = vector.broadcast %49 : vector<256x1xi1> to vector<256x256xi1>
    %51 = vector.shape_cast %48 : vector<1x256xf32> to vector<1x256xf32>
    %52 = vector.broadcast %51 : vector<1x256xf32> to vector<256x256xf32>
    %53 = vector.broadcast %cst_11 : f32 to vector<256x256xf32>
    %54 = arith.select %50, %52, %53 : vector<256x256xi1>, vector<256x256xf32>
    %55 = arith.addf %42, %54 : vector<256x256xf32>
    %56 = arith.truncf %55 : vector<256x256xf32> to vector<256x256xbf16>
    %c0_12 = arith.constant 0 : index
    %c0_13 = arith.constant 0 : index
    %57 = vector.load %arg3[%c0_12, %c0_13] : memref<48x256xbf16, #tpu.memory_space<vmem>>, vector<48x256xbf16>
    %c0_14 = arith.constant 0 : index
    %c0_15 = arith.constant 0 : index
    %58 = vector.load %arg4[%c0_14, %c0_15] : memref<256x256xbf16, #tpu.memory_space<vmem>>, vector<256x256xbf16>
    %59 = arith.mulf %58, %56 : vector<256x256xbf16>
    %cst_16 = arith.constant dense<0.000000e+00> : vector<48x256xf32>
    %60 = tpu.matmul %57, %59, %cst_16 {dimension_numbers = #tpu.dot_dimension_numbers<[1], [0], [0], [1], [0, 0, 1, 1], [], []>} : vector<48x256xbf16>, vector<256x256xbf16>, vector<48x256xf32> -> vector<48x256xf32>
    %c0_17 = arith.constant 0 : index
    %c0_18 = arith.constant 0 : index
    %61 = vector.load %arg5[%c0_17, %c0_18] : memref<1x256xf32, #tpu.memory_space<vmem>>, vector<1x256xf32>
    %62 = vector.broadcast %61 : vector<1x256xf32> to vector<48x256xf32>
    %63 = arith.addf %60, %62 : vector<48x256xf32>
    %c0_19 = arith.constant 0 : index
    %c0_20 = arith.constant 0 : index
    %64 = vector.load %arg6[%c0_19, %c0_20] : memref<48x256xf32, #tpu.memory_space<vmem>>, vector<48x256xf32>
    tpu.vector_store %arg6[%c0_19, %c0_20], %63 {strides = array<i32>} : memref<48x256xf32, #tpu.memory_space<vmem>>, vector<48x256xf32>,
    return
  }
  func.func @transform_0(%arg0: i32, %arg1: i32) -> (i32, i32) {
    %c0_i32 = arith.constant 0 : i32
    %c0_i32_0 = arith.constant 0 : i32
    return %c0_i32, %arg1 : i32, i32
  }
  func.func @transform_1(%arg0: i32, %arg1: i32) -> (i32, i32) {
    %c0_i32 = arith.constant 0 : i32
    %c0_i32_0 = arith.constant 0 : i32
    return %arg0, %c0_i32 : i32, i32
  }
  func.func @transform_2(%arg0: i32, %arg1: i32) -> (i32, i32) {
    %c0_i32 = arith.constant 0 : i32
    %c0_i32_0 = arith.constant 0 : i32
    return %c0_i32, %arg1 : i32, i32
  }
  func.func @transform_3(%arg0: i32, %arg1: i32) -> (i32, i32) {
    %c0_i32 = arith.constant 0 : i32
    %c0_i32_0 = arith.constant 0 : i32
    return %c0_i32, %arg1 : i32, i32
  }
  func.func @transform_4(%arg0: i32, %arg1: i32) -> (i32, i32) {
    %c0_i32 = arith.constant 0 : i32
    return %arg0, %arg1 : i32, i32
  }
}

</mosaic_0001>

<bundles_post_ra>
// kernel: lossy_linear_forward.1
= control target key start
LH: loop header
LB: loop body
LE: loop exit
PB: predicated region body
PF: predicated region fallthrough
CT: control target
= control target key end

     0   :  { %9 = vsyncpa [#allocation3], 0  ;;  %s2768_s0 = inlined_call_operand.vmem [shape: f32[8,256], index: 0, kind: input, shape index: {}]   ;;  %s2769_s1 = inlined_call_operand.vmem [shape: bf16[96,256], index: 1, kind: input, shape index: {}]   ;;  %s2770_s2 = inlined_call_operand.vmem [shape: bf16[256,256], index: 2, kind: input, shape index: {}]   ;;  %s2771_s3 = inlined_call_operand.vmem [shape: f32[1,256], index: 3, kind: input, shape index: {}]   ;;  %s2772_s4 = inlined_call_operand.hbm [shape: f32[96,256], index: 4, kind: output, shape index: {}]  }
   0x1   :  { %11 = vsyncpa [#allocation3 + $0x1], 0  ;;  %s2517_s15 = smov 0   ;;  %s2519_s16 = smov 0  }
   0x2   :  { %s2521_s17 = smov 0   ;;  %s2523_s18 = smov 0  }
   0x3   :  { %s2525_s19 = smov 0   ;;  %s2527_s20 = smov 0  }
   0x4 LB: > { %s2187_s21 = sadd.s32 4294967295, %s2487_s20   ;;  %s2188_s22 = sadd.s32 4294967294, %s2487_s20   ;;  %s2487_s20 = sphi %s2527_s20, %s17_s20   ;;  %s2483_s19 = sphi %s2525_s19, %s2779_s19   ;;  %s2479_s18 = sphi %s2523_s18, %s2778_s18   ;;  %s2475_s17 = sphi %s2521_s17, %s2777_s17   ;;  %s2471_s16 = sphi %s2519_s16, %s2776_s16   ;;  %s2467_s15 = sphi %s2517_s15, %s2775_s15  }
   0x5   : > { %s29_s23 = sadd.s32 1, %s2483_s19  ;;  %s142_s24 = sadd.s32 1, %s2475_s17 }
   0x6   : > { %p31_p0 = scmp.ge.s32.totalorder %s29_s23, 2  ;;  %p152_p1 = scmp.ne.s32.totalorder %s2475_s17, %s2471_s16 }
   0x7   : > { %p153_p2 = scmp.eq.s32.totalorder %s2187_s21, 1  ;;  %p158_p3 = scmp.ne.s32.totalorder %s2471_s16, %s2467_s15 }
   0x8   : > { %s2781_s23 = smov (%p31_p0, %s29_s23), 0  ;;  %p159_p5 = scmp.eq.s32.totalorder %s2188_s22, 1 }
   0x9   : > { %p2557_p4 = por %p153_p2, %p152_p1  ;;  %s137_s26 = ssub.s32 %s2483_s19, %s2781_s23 }
   0xa   : > { %p2194_p6 = scmp.ge.s32.totalorder %s2487_s20, 1  ;;  %p140_p7 = scmp.eq.s32.totalorder %s137_s26, 0 }
   0xb   : > { %p2564_p8 = por %p159_p5, %p158_p3  ;;  %p213_p9 = scmp.lt.s32.totalorder %s2487_s20, 3 }
   0xc   : > { %s2570_s28 = scalar_select %p140_p7, %s2475_s17, %s142_s24  }
   0xd   : > { %p214_p10 = pnand %p2194_p6, %p213_p9 }
   0xe   : > { %v475_v0 = vlaneseq (!%p214_p10)  ;;  %s260_s29 = smul.u32 (!%p214_p10), 6, %s2479_s18  ;;  %v409_v2 = vld [vmem:[%s2768_s0] ss:$8 sm:$0x3] (!%p214_p10)  ;;  %v1556_v9 = vld [vmem:[%s2770_s2 + $0x10] sm:$0xff] (!%p214_p10)  ;;  %v1557_v10 = vld [vmem:[%s2770_s2 + $0x18] sm:$0xff] (!%p214_p10) }
   0xf   : > { %217 = sbr.rel (%p214_p10) target bundleno = 332 (0x14c), region = 36  ;;  %v1554_v7 = vld [vmem:[%s2770_s2] sm:$0xff] (!%p214_p10)  ;;  %v1555_v8 = vld [vmem:[%s2770_s2 + $0x8] sm:$0xff] (!%p214_p10)  ;;  %v1560_v20 = vld [vmem:[%s2770_s2 + $0x30] sm:$0xff] (!%p214_p10)  ;;  %s251_s30 = sand.u32 (!%p214_p10), 1, %s2471_s16  }
  0x10   : > { %v476_v1 = vshrl.u32 (!%p214_p10), %v475_v0, 7  ;;  %p261_p11 = scmp.lt.s32.totalorder (!%p214_p10), %s260_s29, 11  ;;  %v1558_v12 = vld [vmem:[%s2770_s2 + $0x20] sm:$0xff] (!%p214_p10)  ;;  %v1559_v14 = vld [vmem:[%s2770_s2 + $0x28] sm:$0xff] (!%p214_p10)  ;;  %v1561_v27 = vld [vmem:[%s2770_s2 + $0x38] sm:$0xff] (!%p214_p10)  ;;  %s2342_s7 = smul.u32 (!%p214_p10), 96, %s251_s30 }
  0x11   : > { %v2197_v13 = vld [vmem:[%s2768_s0 + $0x1] ss:$8 sm:$0x3] (!%p214_p10)  ;;  %v1564_v41 = vld [vmem:[%s2770_s2 + $0x50] sm:$0xff] (!%p214_p10)  ;;  %v1565_v42 = vld [vmem:[%s2770_s2 + $0x58] sm:$0xff] (!%p214_p10)  ;;  %s2309_s8 = smul.u32 (!%p214_p10), 1536, %s2479_s18 }
  0x12   : > { %v2576_v3 = vsub.s32 (!%p214_p10), 0, %v476_v1  ;;  %v2578_v4 = vsub.s32 (!%p214_p10), 1, %v476_v1  ;;  %v1562_v35 = vld [vmem:[%s2770_s2 + $0x40] sm:$0xff] (!%p214_p10)  ;;  %v1563_v36 = vld [vmem:[%s2770_s2 + $0x48] sm:$0xff] (!%p214_p10)  ;;  %v1568_v56 = vld [vmem:[%s2770_s2 + $0x70] sm:$0xff] (!%p214_p10)  ;;  %s2722_s18 = scalar_lea.sflag (!%p214_p10), [#allocation3], %s251_s30 }
  0x13   : > { %v2198_v47 = vld [vmem:[%s2768_s0 + $0x2] ss:$8 sm:$0x3] (!%p214_p10)  ;;  %v1569_v57 = vld [vmem:[%s2770_s2 + $0x78] sm:$0xff] (!%p214_p10)  ;;  %s2716_s12 = scalar_lea.hbm (!%p214_p10), %s2772_s4, %s2309_s8 }
  0x14   : > { %v478_v5 = vrot.slane (!%p214_p10), %v409_v2, %v2576_v3  ;;  %v482_v6 = vrot.slane (!%p214_p10), %v409_v2, %v2578_v4  ;;  %v779_v21 = vrot.slane (!%p214_p10), %v2197_v13, %v2576_v3  ;;  %v783_v22 = vrot.slane (!%p214_p10), %v2197_v13, %v2578_v4  ;;  %v1566_v48 = vld [vmem:[%s2770_s2 + $0x60] sm:$0xff] (!%p214_p10)  ;;  %v1567_v49 = vld [vmem:[%s2770_s2 + $0x68] sm:$0xff] (!%p214_p10) }
  0x15   : > { %v1080_v51 = vrot.slane (!%p214_p10), %v2198_v47, %v2576_v3  ;;  %v1084_v52 = vrot.slane (!%p214_p10), %v2198_v47, %v2578_v4  ;;  %v1570_v63 = vld [vmem:[%s2770_s2 + $0x80] sm:$0xff] (!%p214_p10)  ;;  %v1571_v0 = vld [vmem:[%s2770_s2 + $0x88] sm:$0xff] (!%p214_p10)  ;;  %v1584_v47 = vld [vmem:[%s2770_s2 + $0xf0] sm:$0xff] (!%p214_p10) }
  0x16   : > { %s2783_s29 = smov (!%p261_p11, %s260_s29), 11  ;;  %v2275_v11 = vpack.c.bf16 %v482_v6, %v478_v5  ;;  %v2283_v31 = vpack.c.bf16 %v783_v22, %v779_v21  ;;  %v1574_v13 = vld [vmem:[%s2770_s2 + $0xa0] sm:$0xff]  ;;  %v1576_v22 = vld [vmem:[%s2770_s2 + $0xb0] sm:$0xff] }
  0x17   : > { %s2274_s14 = sshll.u32 %s2783_s29, 3  ;;  %v2291_v59 = vpack.c.bf16 %v1084_v52, %v1080_v51 }
  0x18   : > { %v1746_v15 = vmul.bf16 %v2275_v11, %v1554_v7  ;;  %v1747_v16 = vmul.bf16 %v2275_v11, %v1555_v8  ;;  %v1748_v17 = vmul.bf16 %v2275_v11, %v1556_v9  ;;  %v1749_v18 = vmul.bf16 %v2275_v11, %v1557_v10  ;;  %s2606_s29 = scalar_lea.vmem %s2769_s1, %s2274_s14  ;;  %v1572_v7 = vld [vmem:[%s2770_s2 + $0x90] sm:$0xff]  ;;  %v1573_v8 = vld [vmem:[%s2770_s2 + $0x98] sm:$0xff]  ;;  %s2489_s14 = smov [#allocation2]  }
  0x19   : > { %v1750_v19 = vmul.bf16 %v2275_v11, %v1558_v12  ;;  %v1751_v26 = vmul.bf16 %v2275_v11, %v1559_v14  ;;  %v2402_v28 = vld [vmem:[%s2606_s29 + $0x14] ss:$8 sps:$4 sm:$0xff]   ;;  %v2405_v29 = vld [vmem:[%s2606_s29 + $0x4] ss:$8 sps:$4 sm:$0xff]   ;;  %v1752_v33 = vmul.bf16 %v2275_v11, %v1560_v20  ;;  %v1753_v34 = vmul.bf16 %v2275_v11, %v1561_v27  ;;  %s2413_s21 = sshll.u32 %s2489_s14, 4  ;;  %s2414_s21 = int_to_ptr.vmem [resolvable:$false] %s2413_s21 }
  0x1a   : > { %v2239_v23 = vcombine.high %v1746_v15, %v1747_v16  ;;  %v2238_v24 = vcombine.low %v1746_v15, %v1747_v16  ;;  %v2241_v25 = vcombine.high %v1748_v17, %v1749_v18  ;;  %v2240_v30 = vcombine.low %v1748_v17, %v1749_v18  ;;  %2022 = vmatprep.mubr.bf16.mxu1 %v2402_v28  ;;  %v1575_v14 = vld [vmem:[%s2770_s2 + $0xa8] sm:$0xff]  ;;  %s2415_s22 = scalar_lea.vmem %s2414_s21, 3072 }
  0x1b   : > { %v2243_v32 = vcombine.high %v1750_v19, %v1751_v26  ;;  %2012 = vmatprep.mubr.bf16.mxu0 %v2405_v29  ;;  %v2242_v37 = vcombine.low %v1750_v19, %v1751_v26  ;;  %v2245_v38 = vcombine.high %v1752_v33, %v1753_v34  ;;  %v1754_v39 = vmul.bf16 %v2283_v31, %v1562_v35  ;;  %v2199_v15 = vld [vmem:[%s2768_s0 + $0x3] ss:$8 sm:$0x3]  ;;  %v1580_v35 = vld [vmem:[%s2770_s2 + $0xd0] sm:$0xff] }
  0x1c   : > { %2310 = vmatprep.subr.bf16.mxu1 %v2239_v23  ;;  %1980 = vmatprep.subr.bf16.mxu0 %v2239_v23  ;;  %v1755_v40 = vmul.bf16 %v2283_v31, %v1563_v36  ;;  %v2244_v43 = vcombine.low %v1752_v33, %v1753_v34  ;;  %v1756_v45 = vmul.bf16 %v2283_v31, %v1564_v41  ;;  %v1577_v23 = vld [vmem:[%s2770_s2 + $0xb8] sm:$0xff]  ;;  %v1578_v29 = vld [vmem:[%s2770_s2 + $0xc0] sm:$0xff] }
  0x1d   : > { %2326 = vmatpush1.bf16.msra.mxu1 %v2238_v24  ;;  %1981 = vmatpush1.bf16.msra.mxu0 %v2238_v24  ;;  %v1757_v46 = vmul.bf16 %v2283_v31, %v1565_v42  ;;  %v1758_v54 = vmul.bf16 %v2283_v31, %v1566_v48  ;;  %v1759_v55 = vmul.bf16 %v2283_v31, %v1567_v49  ;;  %v1581_v36 = vld [vmem:[%s2770_s2 + $0xd8] sm:$0xff]  ;;  %v1582_v41 = vld [vmem:[%s2770_s2 + $0xe0] sm:$0xff]  ;;  %v1583_v42 = vld [vmem:[%s2770_s2 + $0xe8] sm:$0xff] }
  0x1e   : > { %2311 = vmatprep.subr.bf16.mxu1 %v2241_v25  ;;  %1982 = vmatprep.subr.bf16.mxu0 %v2241_v25  ;;  %v2247_v44 = vcombine.high %v1754_v39, %v1755_v40  ;;  %v2246_v50 = vcombine.low %v1754_v39, %v1755_v40  ;;  %v1760_v61 = vmul.bf16 %v2283_v31, %v1568_v56  ;;  %v1585_v48 = vld [vmem:[%s2770_s2 + $0xf8] sm:$0xff] }
  0x1f   : > { %v2249_v53 = vcombine.high %v1756_v45, %v1757_v46  ;;  %v2248_v58 = vcombine.low %v1756_v45, %v1757_v46  ;;  %v2251_v60 = vcombine.high %v1758_v54, %v1759_v55  ;;  %v1761_v62 = vmul.bf16 %v2283_v31, %v1569_v57  ;;  %v2400_v56 = vld [vmem:[%s2606_s29 + $0x10] ss:$8 sps:$4 sm:$0xff]   ;;  %v2403_v57 = vld [vmem:[%s2606_s29] ss:$8 sps:$4 sm:$0xff]  }
  0x20   : > { %v2250_v1 = vcombine.low %v1758_v54, %v1759_v55  ;;  %v1762_v5 = vmul.bf16 %v2291_v59, %v1570_v63  ;;  %v1763_v6 = vmul.bf16 %v2291_v59, %v1571_v0  ;;  %v1764_v11 = vmul.bf16 %v2291_v59, %v1572_v7 }
  0x21   : > { %2327 = vmatpush1.bf16.msra.mxu1 %v2240_v30  ;;  %1983 = vmatpush1.bf16.msra.mxu0 %v2240_v30  ;;  %v2253_v2 = vcombine.high %v1760_v61, %v1761_v62  ;;  %v2252_v9 = vcombine.low %v1760_v61, %v1761_v62  ;;  %v1765_v12 = vmul.bf16 %v2291_v59, %v1573_v8  ;;  %v1579_v30 = vld [vmem:[%s2770_s2 + $0xc8] sm:$0xff] }
  0x22   : > { %2312 = vmatprep.subr.bf16.mxu1 %v2243_v32  ;;  %1984 = vmatprep.subr.bf16.mxu0 %v2243_v32  ;;  %v2255_v10 = vcombine.high %v1762_v5, %v1763_v6  ;;  %v2254_v16 = vcombine.low %v1762_v5, %v1763_v6  ;;  %v1766_v17 = vmul.bf16 %v2291_v59, %v1574_v13 }
  0x23   : > { %v1767_v18 = vmul.bf16 %v2291_v59, %v1575_v14  ;;  %v2257_v19 = vcombine.high %v1764_v11, %v1765_v12  ;;  %v1381_v20 = vrot.slane %v2199_v15, %v2576_v3  ;;  %v1385_v21 = vrot.slane %v2199_v15, %v2578_v4 }
  0x24   : > { %v2256_v24 = vcombine.low %v1764_v11, %v1765_v12  ;;  %v1768_v26 = vmul.bf16 %v2291_v59, %v1576_v22  ;;  %v1769_v27 = vmul.bf16 %v2291_v59, %v1577_v23  ;;  %v2408_v59 = vld [vmem:[%s2606_s29 + $0x20] ss:$8 sps:$4 sm:$0xff]  }
  0x25   : > { %2328 = vmatpush1.bf16.msra.mxu1 %v2242_v37  ;;  %1985 = vmatpush1.bf16.msra.mxu0 %v2242_v37  ;;  %v2259_v25 = vcombine.high %v1766_v17, %v1767_v18  ;;  %v2299_v28 = vpack.c.bf16 %v1385_v21, %v1381_v20  ;;  %v2258_v31 = vcombine.low %v1766_v17, %v1767_v18 }
  0x26   : > { %2313 = vmatprep.subr.bf16.mxu1 %v2245_v38  ;;  %1986 = vmatprep.subr.bf16.mxu0 %v2245_v38  ;;  %v2261_v32 = vcombine.high %v1768_v26, %v1769_v27  ;;  %v2260_v37 = vcombine.low %v1768_v26, %v1769_v27 }
  0x27   : > { %v1770_v33 = vmul.bf16 %v2299_v28, %v1578_v29  ;;  %v1771_v34 = vmul.bf16 %v2299_v28, %v1579_v30  ;;  %v1772_v39 = vmul.bf16 %v2299_v28, %v1580_v35  ;;  %v1773_v40 = vmul.bf16 %v2299_v28, %v1581_v36 }
  0x28   : > { %v1774_v45 = vmul.bf16 %v2299_v28, %v1582_v41  ;;  %v1775_v46 = vmul.bf16 %v2299_v28, %v1583_v42  ;;  %v1776_v51 = vmul.bf16 %v2299_v28, %v1584_v47  ;;  %v1777_v52 = vmul.bf16 %v2299_v28, %v1585_v48 }
  0x29   : > { %2329 = vmatpush1.bf16.msra.mxu1 %v2244_v43  ;;  %1987 = vmatpush1.bf16.msra.mxu0 %v2244_v43  ;;  %v2263_v38 = vcombine.high %v1770_v33, %v1771_v34  ;;  %v2262_v43 = vcombine.low %v1770_v33, %v1771_v34  ;;  %v2264_v49 = vcombine.low %v1772_v39, %v1773_v40 }
  0x2a   : > { %2314 = vmatprep.subr.bf16.mxu1 %v2247_v44  ;;  %1988 = vmatprep.subr.bf16.mxu0 %v2247_v44  ;;  %v2265_v44 = vcombine.high %v1772_v39, %v1773_v40  ;;  %v2269_v54 = vcombine.high %v1776_v51, %v1777_v52  ;;  %v2268_v55 = vcombine.low %v1776_v51, %v1777_v52 }
  0x2d   : > { %2330 = vmatpush1.bf16.msra.mxu1 %v2246_v50  ;;  %1989 = vmatpush1.bf16.msra.mxu0 %v2246_v50  ;;  %v2267_v50 = vcombine.high %v1774_v45, %v1775_v46 }
  0x2e   : > { %2315 = vmatprep.subr.bf16.mxu1 %v2249_v53  ;;  %1990 = vmatprep.subr.bf16.mxu0 %v2249_v53  ;;  %v2266_v53 = vcombine.low %v1774_v45, %v1775_v46 }
  0x31   : > { %2331 = vmatpush1.bf16.msra.mxu1 %v2248_v58  ;;  %1991 = vmatpush1.bf16.msra.mxu0 %v2248_v58  ;;  %v2406_v58 = vld [vmem:[%s2606_s29 + $0x24] ss:$8 sps:$4 sm:$0xff]   ;;  %s253_s29 = scalar_lea.vmem [#allocation2], %s2342_s7 }
  0x32   : > { %2316 = vmatprep.subr.bf16.mxu1 %v2251_v60  ;;  %1992 = vmatprep.subr.bf16.mxu0 %v2251_v60  ;;  %v1778_v60 = vld [vmem:[%s2771_s3] sm:$0x3]  ;;  %s2072_s9 = sshll.u32 %s253_s29, 4  ;;  %s2718_s9 = int_to_ptr.vmem [resolvable:$true] %s2072_s9 }
  0x33   : > { %v1783_v61 = vrot.slane %v1778_v60, %v2576_v3  ;;  %v1787_v62 = vrot.slane %v1778_v60, %v2578_v4  ;;  %s2409_s13 = scalar_lea.vmem %s2718_s9, 1536  ;;  %p2416_p1 = scmp.lt.s32.totalorder %s2718_s9, %s2414_s21 }
  0x34   : > { %p2410_p12 = scmp.ne.s32.totalorder %s2718_s9, %s2409_s13  ;;  %p2417_p2 = scmp.lt.s32.totalorder %s2415_s22, %s2409_s13 }
  0x35   : > { %2332 = vmatpush1.bf16.msra.mxu1 %v2250_v1  ;;  %1993 = vmatpush1.bf16.msra.mxu0 %v2250_v1 }
  0x36   : > { %2317 = vmatprep.subr.bf16.mxu1 %v2253_v2  ;;  %1994 = vmatprep.subr.bf16.mxu0 %v2253_v2  ;;  %p2411_p13 = pnand %p2410_p12, %p2557_p4  ;;  %p2418_p3 = por %p2417_p2, %p2416_p1 }
  0x38   : > { %p2412_p0 = pneg %p2411_p13 }
  0x39   : > { %2333 = vmatpush1.bf16.msra.mxu1 %v2252_v9  ;;  %1995 = vmatpush1.bf16.msra.mxu0 %v2252_v9 }
  0x3a   : > { %2318 = vmatprep.subr.bf16.mxu1 %v2255_v10  ;;  %1996 = vmatprep.subr.bf16.mxu0 %v2255_v10  ;;  %p2419_p5 = pnand %p2418_p3, %p2412_p0 }
  0x3d   : > { %2334 = vmatpush1.bf16.msra.mxu1 %v2254_v16  ;;  %1997 = vmatpush1.bf16.msra.mxu0 %v2254_v16 }
  0x3e   : > { %2319 = vmatprep.subr.bf16.mxu1 %v2257_v19  ;;  %1998 = vmatprep.subr.bf16.mxu0 %v2257_v19 }
  0x41   : > { %2335 = vmatpush1.bf16.msra.mxu1 %v2256_v24  ;;  %1999 = vmatpush1.bf16.msra.mxu0 %v2256_v24 }
  0x42   : > { %2320 = vmatprep.subr.bf16.mxu1 %v2259_v25  ;;  %2000 = vmatprep.subr.bf16.mxu0 %v2259_v25 }
  0x45   : > { %2336 = vmatpush1.bf16.msra.mxu1 %v2258_v31  ;;  %2001 = vmatpush1.bf16.msra.mxu0 %v2258_v31 }
  0x46   : > { %2321 = vmatprep.subr.bf16.mxu1 %v2261_v32  ;;  %2002 = vmatprep.subr.bf16.mxu0 %v2261_v32 }
  0x49   : > { %2337 = vmatpush1.bf16.msra.mxu1 %v2260_v37  ;;  %2003 = vmatpush1.bf16.msra.mxu0 %v2260_v37 }
  0x4a   : > { %2322 = vmatprep.subr.bf16.mxu1 %v2263_v38  ;;  %2004 = vmatprep.subr.bf16.mxu0 %v2263_v38 }
  0x4d   : > { %2338 = vmatpush1.bf16.msra.mxu1 %v2262_v43  ;;  %2005 = vmatpush1.bf16.msra.mxu0 %v2262_v43 }
  0x4e   : > { %2323 = vmatprep.subr.bf16.mxu1 %v2265_v44  ;;  %2006 = vmatprep.subr.bf16.mxu0 %v2265_v44 }
  0x51   : > { %2339 = vmatpush1.bf16.msra.mxu1 %v2264_v49  ;;  %2007 = vmatpush1.bf16.msra.mxu0 %v2264_v49 }
  0x52   : > { %2324 = vmatprep.subr.bf16.mxu1 %v2267_v50  ;;  %2008 = vmatprep.subr.bf16.mxu0 %v2267_v50 }
  0x55   : > { %2340 = vmatpush1.bf16.msra.mxu1 %v2266_v53  ;;  %2009 = vmatpush1.bf16.msra.mxu0 %v2266_v53 }
  0x56   : > { %2325 = vmatprep.subr.bf16.mxu1 %v2269_v54  ;;  %2010 = vmatprep.subr.bf16.mxu0 %v2269_v54 }
  0x59   : > { %2341 = vmatpush1.bf16.msra.mxu1 %v2268_v55  ;;  %2011 = vmatpush1.bf16.msra.mxu0 %v2268_v55 }
  0x5c   : > { %2023 = vmatmul.mubr.bf16.vlgmr.msra.gmra.mrb[0].mxu1 %v2400_v56  ;;  %2013 = vmatmul.mubr.bf16.vlgmr.msra.gmra.mrb[0].mxu0 %v2403_v57 }
  0x5d   : > { %2032 = vmatprep.mubr.bf16.mxu1 %v2406_v58 }
  0x64   : > { %2033 = vmatmul.mubr.bf16.gmra.mrb[4].mxu1 %v2408_v59 }
 0x12f   : > { %v2024_v63 = vpop.f32.mrb[0].mxu1  ;;  %v2014_v0 = vpop.f32.mrb[0].mxu0 }
 0x130   : > { %v2025_v1 = vadd.f32 %v2024_v63, %v1783_v61  ;;  %v2026_v2 = vpop.f32.mrb[1].mxu1  ;;  %v2015_v5 = vadd.f32 %v2014_v0, %v1783_v61  ;;  %v2016_v6 = vpop.f32.mrb[1].mxu0 }
 0x131   : > { %v2027_v7 = vadd.f32 %v2026_v2, %v1787_v62  ;;  %v2028_v8 = vpop.f32.mrb[2].mxu1  ;;  %v2017_v9 = vadd.f32 %v2016_v6, %v1787_v62  ;;  %v2018_v10 = vpop.f32.mrb[2].mxu0 }
 0x132   : > { %2047 = vst [vmem:[%s253_s29 + $0x20] sm:$0xff] %v2025_v1  ;;  %v2029_v11 = vadd.f32 %v2028_v8, %v1783_v61  ;;  %v2030_v12 = vpop.f32.mrb[3].mxu1  ;;  %2043 = vst [vmem:[%s253_s29] sm:$0xff] %v2015_v5  ;;  %v2019_v13 = vadd.f32 %v2018_v10, %v1783_v61  ;;  %v2020_v3 = vpop.f32.mrb[3].mxu0 }
 0x133   : > { %2048 = vst [vmem:[%s253_s29 + $0x28] sm:$0xff] %v2027_v7  ;;  %v2031_v4 = vadd.f32 %v2030_v12, %v1787_v62  ;;  %2044 = vst [vmem:[%s253_s29 + $0x8] sm:$0xff] %v2017_v9  ;;  %v2021_v14 = vadd.f32 %v2020_v3, %v1787_v62 }
 0x134   : > { %2049 = vst [vmem:[%s253_s29 + $0x30] sm:$0xff] %v2029_v11  ;;  %2045 = vst [vmem:[%s253_s29 + $0x10] sm:$0xff] %v2019_v13 }
 0x135   : > { %2050 = vst [vmem:[%s253_s29 + $0x38] sm:$0xff] %v2031_v4  ;;  %2046 = vst [vmem:[%s253_s29 + $0x18] sm:$0xff] %v2021_v14 }
 0x137   : > { %v2034_v15 = vpop.f32.mrb[4].mxu1 }
 0x138   : > { %v2035_v16 = vadd.f32 %v2034_v15, %v1783_v61  ;;  %v2036_v17 = vpop.f32.mrb[5].mxu1 }
 0x139   : > { %v2037_v18 = vadd.f32 %v2036_v17, %v1787_v62  ;;  %v2038_v19 = vpop.f32.mrb[6].mxu1 }
 0x13a   : > { %2051 = vst [vmem:[%s253_s29 + $0x40] sm:$0xff] %v2035_v16  ;;  %v2039_v20 = vadd.f32 %v2038_v19, %v1783_v61  ;;  %v2040_v21 = vpop.f32.mrb[7].mxu1 }
 0x13b   : > { %2052 = vst [vmem:[%s253_s29 + $0x48] sm:$0xff] %v2037_v18  ;;  %v2041_v22 = vadd.f32 %v2040_v21, %v1787_v62 }
 0x13c   : > { %2053 = vst [vmem:[%s253_s29 + $0x50] sm:$0xff] %v2039_v20 }
 0x13d   : > { %2054 = vst [vmem:[%s253_s29 + $0x58] sm:$0xff] %v2041_v22 }
 0x13e   : > { %2422 = shalt.err (!%p2419_p5)
}
 0x13f   : > { %s2423_s24 = scalar_lea.hbm %s2716_s12, 1536  ;;  %s2427_s5 = scalar_lea.hbm %s2772_s4, 3072 }
 0x140   : > { %p2424_p6 = scmp.ne.s32.totalorder %s2716_s12, %s2423_s24  ;;  %p2428_p10 = scmp.lt.u32.totalorder %s2716_s12, %s2772_s4 }
 0x141   : > { %p2429_p11 = scmp.lt.u32.totalorder %s2427_s5, %s2423_s24  ;;  %p2431_p13 = scmp.lt.u32.totalorder %s2423_s24, %s2716_s12 }
 0x142   : > { %p2425_p7 = pnand %p2424_p6, %p2557_p4 }
 0x143   : > { %p2430_p12 = por %p2429_p11, %p2428_p10 }
 0x144   : > { %p2426_p9 = pneg %p2425_p7 }
 0x145   : > { %p2432_p0 = por %p2431_p13, %p2430_p12 }
 0x147   : > { %p2433_p1 = pnand %p2432_p0, %p2426_p9 }
 0x149   : > { %2436 = shalt.err (!%p2433_p1)
}
 0x14a   : > { %s2490_s29 = smov 256   ;;  %s2491_s8 = smov 16  }
 0x14b   : > { %2343 = dma.vmem_to_hbm [thread:$0]  (%p2557_p4), %s2718_s9, 1536, %s2716_s12, %s2722_s18, %s2490_s29, %s2490_s29, %s2491_s8  }
 0x14c PF: > { %p2349_p2 = scmp.ge.s32.totalorder %s2487_s20, 2  ;;  %s2087_s10 = sand.u32 1, %s2467_s15  }
 0x14d   : > { %s2088_s11 = scalar_lea.sflag [#allocation3], %s2087_s10 }
 0x14e   : > { %p2346_p3 = pnand %p2349_p2, %p2564_p8 }
 0x150   : > { %2462 = dma.done.wait (!%p2346_p3), %s2088_s11, 1536  }
 0x151   : > { %2464 = vsyncadd (!%p2346_p3), %s2088_s11, 4294965760  ;;  %s17_s20 = sadd.s32 1, %s2487_s20   ;;  %s2775_s15 = smov %s2471_s16 }
 0x152   : > { %p14_p5 = scmp.ge.s32.totalorder %s17_s20, 4   ;;  %s2776_s16 = smov %s2475_s17 }
 0x153   : > { %s2777_s17 = smov %s2570_s28  ;;  %s2778_s18 = smov %s2483_s19 }
 0x154   : > { %s2779_s19 = smov %s2781_s23  ;;  %16 = sbr.rel (!%p14_p5) target bundleno = 4 (0x4), region = 83 }
 0x15b   :  { %2093 = vsyncpa [#allocation3], 1 }
 0x15c   :  { %2095 = vsyncpa [#allocation3 + $0x1], 1 }

</bundles_post_ra>
